<compile_context>
chip_gen: v7x
topology: tpu7x:2x2x1
jax: 0.10.0
libtpu: 0.0.40
codegen_flags: <defaults>
</compile_context>

<pallas_src>
import functools

import jax
import jax.numpy as jnp
from jax.experimental import pallas as pl
from jax.experimental.pallas import tpu as pltpu

A = 0.88
B = 0.88
S = 64.0


def _linear_margin_kernel(cos_ref, lab_ref, tv_ref, out_ref, *, s):
    # cos_ref: (TM, TN) tile of cosine logits (f32 or bf16)
    # lab_ref: (TM, 1)  i32 per-row class label (-1 => row is only scaled by s)
    # tv_ref:  (TM, 1)  f32 precomputed target value: -a * acos(cos[i, label[i]]) + b
    tm, tn = cos_ref.shape
    # Shift the label by this tile's class offset (a (TM,1) op) instead of offsetting the
    # full (TM,TN) iota: one fewer VALU op per vreg. label == -1 and labels belonging to
    # other class tiles fall outside [0, TN) and never match -> no extra validity mask.
    local_lab = lab_ref[...] - pl.program_id(1) * tn
    col = jax.lax.broadcasted_iota(jnp.int32, (tm, tn), 1)
    is_target = col == local_lab
    out_ref[...] = (jnp.where(is_target, tv_ref[...], cos_ref[...]) * s).astype(out_ref.dtype)


def linear_margin(cosine, label, *, a=A, b=B, s=S, tile_m=None, tile_n=None):
    """Pallas implementation of Linear.forward.

    Pure HBM-streaming kernel: reads and writes the N*C logits exactly once. The N-point
    acos glue (no Mosaic lowering for acos) runs in plain JAX on the gathered target
    logits before the call. Donate the `cosine` buffer at the jit boundary so
    input_output_aliases={0: 0} really writes in place (otherwise XLA inserts a defensive
    copy of the whole N*C matrix that costs as much as the kernel itself).
    """
    n, c = cosine.shape
    label = label.astype(jnp.int32)
    valid = label != -1
    safe_label = jnp.where(valid, label, 0)
    # O(N) gather of the target logits; acos + affine applied outside the kernel.
    # TODO(synk): for very large C verify this gather's HLO (a one-hot-matmul fallback
    # would re-read the whole N*C matrix); the real fix is fusing into the producer matmul.
    gathered = jnp.take_along_axis(cosine, safe_label[:, None], axis=1).astype(jnp.float32)
    theta = jnp.arccos(jnp.clip(gathered, -1.0, 1.0))      # clamp guards fp noise past +/-1
    target_val = (-a) * theta + b                          # (N, 1) f32

    # ---- tile-shape hygiene (dtype/packing aware) ---------------------------------
    itemsize = jnp.dtype(cosine.dtype).itemsize
    packing = max(1, 4 // itemsize)       # f32 -> 1, bf16 -> 2 sublane packing
    row_align = 8 * packing               # f32 tiles: rows % 8; bf16: rows % 16
    lane = 128
    if tile_m is None:
        tile_m = 512
    if tile_n is None:
        # Keep the block at ~4 MiB regardless of dtype: bf16 halves the bytes, so double
        # the class-tile width to keep per-grid-step overhead amortized (~85-90% roofline).
        tile_n = 2048 * packing
    tile_m = max(row_align, (tile_m // row_align) * row_align)
    tile_n = max(lane, (tile_n // lane) * lane)
    if n <= tile_m:
        tile_m = n                         # full-dim block (allowed even if unaligned)
    if c <= tile_n:
        tile_n = c
    # v7x megacore: the grid is the only cross-TensorCore parallelism here. If everything
    # collapsed into a single block, split the class axis so both cores get work.
    if pl.cdiv(n, tile_m) * pl.cdiv(c, tile_n) == 1 and c >= 2 * lane:
        tile_n = max(lane, (pl.cdiv(c, 2) // lane) * lane)

    grid = (pl.cdiv(n, tile_m), pl.cdiv(c, tile_n))        # tail blocks handled via padding

    # ---- VMEM budget ----------------------------------------------------------------
    # Double-buffered cosine-in + out blocks plus the lane-padded (TM,1) label/target
    # blocks, clamped to [32 MiB, 48 MiB]: above v5e's ~16 MiB scoped default, and well
    # under v7x's 64 MiB physical VMEM so the compiler keeps internal-scratch headroom.
    block_bytes = tile_m * tile_n * itemsize
    aux_bytes = 2 * (2 * tile_m * lane * 4)   # label(i32) + target(f32), double-buffered
    need = 2 * block_bytes + 2 * block_bytes + aux_bytes
    vmem_limit = int(min(48 * 2**20, max(32 * 2**20, need + 8 * 2**20)))

    kernel = functools.partial(_linear_margin_kernel, s=s)
    return pl.pallas_call(
        kernel,
        out_shape=jax.ShapeDtypeStruct((n, c), cosine.dtype),
        grid_spec=pltpu.PrefetchScalarGridSpec(
            num_scalar_prefetch=0,
            grid=grid,
            in_specs=[
                pl.BlockSpec((tile_m, tile_n), lambda i, j: (i, j)),
                # (TM, 1) per-row blocks; index_map is constant along j so they are not
                # re-fetched per class tile. (Single-buffering them would reclaim ~0.5 MiB
                # on v7x, but the 48 MiB cap already leaves ample headroom.)
                pl.BlockSpec((tile_m, 1), lambda i, j: (i, 0)),
                pl.BlockSpec((tile_m, 1), lambda i, j: (i, 0)),
            ],
            out_specs=pl.BlockSpec((tile_m, tile_n), lambda i, j: (i, j)),
        ),
        # Write into the cosine buffer in place when the caller donates it (matches the
        # PyTorch in-place mutation; the alias is a no-op otherwise).
        input_output_aliases={0: 0},
        compiler_params=pltpu.CompilerParams(
            dimension_semantics=("parallel", "parallel"),
            vmem_limit_bytes=vmem_limit,
        ),
    )(cosine, label[:, None], target_val)


def linear_margin_ref(cosine, label, a=A, b=B, s=S):
    """Pure-JAX reference mirroring the PyTorch forward."""
    n, c = cosine.shape
    valid = label != -1
    safe = jnp.where(valid, label, 0)
    onehot = jax.nn.one_hot(safe, c, dtype=jnp.bool_) & valid[:, None]
    theta = jnp.arccos(jnp.clip(cosine.astype(jnp.float32), -1.0, 1.0))
    out = jnp.where(onehot, -a * theta + b, cosine.astype(jnp.float32)) * s
    return out.astype(cosine.dtype)


if __name__ == "__main__":
    key = jax.random.PRNGKey(0)
    n, c = 24, 384
    k1, k2 = jax.random.split(key)
    cosine = jax.random.uniform(k1, (n, c), jnp.float32, minval=-0.99, maxval=0.99)
    label = jax.random.randint(k2, (n,), 0, c).astype(jnp.int32)
    label = label.at[3].set(-1).at[11].set(-1)   # a couple of "ignore" rows (label == -1)

    ref = linear_margin_ref(cosine, label)

    # 1) Explicit small tiles: exercises the 2-D (row, class) grid with padded tail blocks.
    out_small = jax.block_until_ready(
        linear_margin(jnp.copy(cosine), label, tile_m=16, tile_n=128))

    # 2) Default tiles under jit with a *donated* cosine buffer so input_output_aliases
    #    truly writes in place (no defensive N*C copy). Also exercises the megacore split
    #    (grid would otherwise collapse to (1,1) at this small size).
    donated_fn = jax.jit(linear_margin, donate_argnums=(0,))
    out_donated = jax.block_until_ready(donated_fn(jnp.copy(cosine), label))

    for out in (out_small, out_donated):
        assert out.shape == (n, c) and out.dtype == jnp.float32
        err = float(jnp.max(jnp.abs(out - ref)))
        assert jnp.allclose(out, ref, atol=1e-3, rtol=1e-4), f"max abs err {err}"

    # 3) bf16 path: packing-aware tile rounding (rows % 16, doubled class-tile width).
    cos_bf16 = cosine.astype(jnp.bfloat16)
    ref_bf16 = linear_margin_ref(cos_bf16, label)
    out_bf16 = jax.block_until_ready(linear_margin(jnp.copy(cos_bf16), label))
    assert out_bf16.shape == (n, c) and out_bf16.dtype == jnp.bfloat16
    err_bf16 = float(jnp.max(jnp.abs(out_bf16.astype(jnp.float32)
                                     - ref_bf16.astype(jnp.float32))))
    assert err_bf16 < 1.0, f"bf16 max abs err {err_bf16}"

    print("KERNEL_OK")
</pallas_src>

<mosaic_0001>
module attributes {stable_mosaic.version = 11 : i64} {
  func.func @_linear_margin_kernel(%arg0: i32, %arg1: i32, %arg2: memref<16x128xf32, #tpu.memory_space<vmem>>, %arg3: memref<16x1xi32, #tpu.memory_space<vmem>>, %arg4: memref<16x1xf32, #tpu.memory_space<vmem>>, %arg5: memref<16x128xf32, #tpu.memory_space<vmem>>) attributes {dimension_semantics = [#tpu.dimension_semantics<parallel>, #tpu.dimension_semantics<parallel>], iteration_bounds = array<i64: 2, 3>, scalar_prefetch = 0 : i64, scratch_operands = 0 : i64, tpu.core_type = #tpu.core_type<tc>, window_params = [{transform_indices = @transform_0, window_bounds = array<i64: 16, 128>}, {transform_indices = @transform_1, window_bounds = array<i64: 16, 1>}, {transform_indices = @transform_2, window_bounds = array<i64: 16, 1>}, {transform_indices = @transform_3, window_bounds = array<i64: 16, 128>}]} {
    %c0 = arith.constant 0 : index
    %c0_0 = arith.constant 0 : index
    %0 = vector.load %arg3[%c0, %c0_0] : memref<16x1xi32, #tpu.memory_space<vmem>>, vector<16x1xi32>
    %c128_i32 = arith.constant 128 : i32
    %1 = arith.muli %arg1, %c128_i32 : i32
    %2 = vector.broadcast %1 : i32 to vector<16x1xi32>
    %3 = arith.subi %0, %2 : vector<16x1xi32>
    %4 = tpu.iota {dimensions = array<i32: 1>} : vector<16x128xi32>
    %5 = vector.broadcast %3 : vector<16x1xi32> to vector<16x128xi32>
    %6 = arith.cmpi eq, %4, %5 : vector<16x128xi32>
    %c0_1 = arith.constant 0 : index
    %c0_2 = arith.constant 0 : index
    %7 = vector.load %arg4[%c0_1, %c0_2] : memref<16x1xf32, #tpu.memory_space<vmem>>, vector<16x1xf32>
    %c0_3 = arith.constant 0 : index
    %c0_4 = arith.constant 0 : index
    %8 = vector.load %arg2[%c0_3, %c0_4] : memref<16x128xf32, #tpu.memory_space<vmem>>, vector<16x128xf32>
    %9 = vector.shape_cast %7 : vector<16x1xf32> to vector<16x1xf32>
    %10 = vector.broadcast %9 : vector<16x1xf32> to vector<16x128xf32>
    %11 = arith.select %6, %10, %8 : vector<16x128xi1>, vector<16x128xf32>
    %cst = arith.constant 6.400000e+01 : f32
    %12 = vector.broadcast %cst : f32 to vector<16x128xf32>
    %13 = arith.mulf %11, %12 : vector<16x128xf32>
    %c0_5 = arith.constant 0 : index
    %c0_6 = arith.constant 0 : index
    %14 = vector.load %arg5[%c0_5, %c0_6] : memref<16x128xf32, #tpu.memory_space<vmem>>, vector<16x128xf32>
    tpu.vector_store %arg5[%c0_5, %c0_6], %13 {strides = array<i32>} : memref<16x128xf32, #tpu.memory_space<vmem>>, vector<16x128xf32>,
    return
  }
  func.func @transform_0(%arg0: i32, %arg1: i32) -> (i32, i32) {
    %c0_i32 = arith.constant 0 : i32
    return %arg0, %arg1 : i32, i32
  }
  func.func @transform_1(%arg0: i32, %arg1: i32) -> (i32, i32) {
    %c0_i32 = arith.constant 0 : i32
    %c0_i32_0 = arith.constant 0 : i32
    return %arg0, %c0_i32 : i32, i32
  }
  func.func @transform_2(%arg0: i32, %arg1: i32) -> (i32, i32) {
    %c0_i32 = arith.constant 0 : i32
    %c0_i32_0 = arith.constant 0 : i32
    return %arg0, %c0_i32 : i32, i32
  }
  func.func @transform_3(%arg0: i32, %arg1: i32) -> (i32, i32) {
    %c0_i32 = arith.constant 0 : i32
    return %arg0, %arg1 : i32, i32
  }
}

</mosaic_0001>

<bundles_post_ra>
// kernel: tpu_custom_call.1
= control target key start
LH: loop header
LB: loop body
LE: loop exit
PB: predicated region body
PF: predicated region fallthrough
CT: control target
= control target key end

     0   :  { %8 = vsyncpa [#allocation3], 0  ;;  %s974_s0 = inlined_call_operand.hbm [shape: f32[24,384], index: 0, kind: input, shape index: {}, may-alias: {0,3}]   ;;  %s975_s1 = inlined_call_operand.vmem [shape: s32[24,1], index: 1, kind: input, shape index: {}]   ;;  %s976_s2 = inlined_call_operand.vmem [shape: f32[24,1], index: 2, kind: input, shape index: {}]   ;;  %s977_s3 = inlined_call_operand.hbm [shape: f32[24,384], index: 3, kind: output, shape index: {}, may-alias: {0,3}]  }
   0x1   :  { %10 = vsyncpa [#allocation3 + $0x1], 0 }
   0x2   :  { %11 = vsyncpa [#allocation4], 0 }
   0x3   :  { %13 = vsyncpa [#allocation4 + $0x1], 0  ;;  %s746_s12 = smov 0   ;;  %s748_s13 = smov 0  }
   0x4   :  { %s750_s14 = smov 0   ;;  %s752_s15 = smov 0  }
   0x5   :  { %s754_s16 = smov 0   ;;  %s756_s17 = smov 0  }
   0x6   :  { %s758_s18 = smov 0   ;;  %s760_s19 = smov 0  }
   0x7 LB: > { %s477_s20 = sadd.s32 4294967295, %s715_s19   ;;  %s478_s21 = sadd.s32 4294967294, %s715_s19   ;;  %s715_s19 = sphi %s760_s19, %s19_s19   ;;  %s711_s18 = sphi %s758_s18, %s989_s18   ;;  %s707_s17 = sphi %s756_s17, %s988_s17   ;;  %s703_s16 = sphi %s754_s16, %s987_s16   ;;  %s699_s15 = sphi %s752_s15, %s986_s15   ;;  %s695_s14 = sphi %s750_s14, %s985_s14   ;;  %s691_s13 = sphi %s748_s13, %s984_s13   ;;  %s687_s12 = sphi %s746_s12, %s983_s12  }
   0x8   : > { %s28_s22 = sadd.s32 1, %s707_s17  ;;  %s31_s23 = sadd.s32 1, %s711_s18 }
   0x9   : > { %p29_p0 = scmp.ge.s32.totalorder %s28_s22, 3  ;;  %p47_p1 = scmp.ne.s32.totalorder %s695_s14, %s691_s13 }
   0xa   : > { %p48_p2 = scmp.eq.s32.totalorder %s715_s19, 0  ;;  %p53_p5 = scmp.ne.s32.totalorder %s691_s13, %s687_s12 }
   0xb   : > { %s991_s22 = smov (%p29_p0, %s28_s22), 0  ;;  %s993_s23 = smov (!%p29_p0, %s31_s23), %s711_s18 }
   0xc   : > { %s36_s24 = ssub.s32 %s707_s17, %s991_s22  ;;  %p798_p3 = por %p48_p2, %p47_p1 }
   0xd   : > { %p33_p4 = scmp.ge.s32.totalorder %s993_s23, 2  ;;  %p54_p6 = scmp.eq.s32.totalorder %s477_s20, 0 }
   0xe   : > { %p131_p7 = scmp.eq.s32.totalorder %s477_s20, 5  ;;  %p137_p10 = scmp.eq.s32.totalorder %s478_s21, 5 }
   0xf   : > { %s995_s23 = smov (%p33_p4, %s993_s23), 0  ;;  %p806_p8 = por %p54_p6, %p53_p5 }
  0x10   : > { %p810_p9 = por %p131_p7, %p47_p1  ;;  %s35_s28 = ssub.s32 %s711_s18, %s995_s23 }
  0x11   : > { %s37_s29 = sor.u32 %s36_s24, %s35_s28  ;;  %s40_s30 = sadd.s32 1, %s695_s14 }
  0x12   : > { %p38_p11 = scmp.eq.s32.totalorder %s37_s29, 0  ;;  %p817_p12 = por %p137_p10, %p53_p5 }
  0x13   : > { %p480_p13 = scmp.ge.s32.totalorder %s715_s19, 6 }
  0x14   : > { %s981_s4 = scalar_select %p817_p12, 1, 0 }
  0x15   : > { %s822_s5 = scalar_select %p38_p11, %s695_s14, %s40_s30  }
  0x16   : > { %153 = sbr.rel (%p480_p13) target bundleno = 67 (0x43), region = 16 }
  0x1d   : > { %156 = sbr.rel (!%p798_p3) target bundleno = 67 (0x43), region = 20  ;;  %s157_s6 = sand.u32 (%p798_p3), 1, %s695_s14  }
  0x1e   : > { %s482_s7 = sshll.u32 (%p798_p3), %s711_s18, 1  ;;  %s481_s8 = sshll.u32 (%p798_p3), %s157_s6, 4 }
  0x1f   : > { %s163_s9 = ssub.s32 (%p798_p3), 3, %s482_s7  ;;  %s832_s20 = scalar_lea.sflag (%p798_p3), [#allocation3], %s157_s6 }
  0x20   : > { %p164_p0 = scmp.lt.s32.totalorder (%p798_p3), %s163_s9, 2  ;;  %s161_s21 = scalar_lea.vmem (%p798_p3), [#allocation2], %s481_s8 }
  0x24   : > { %s997_s9 = smov (!%p164_p0, %s163_s9), 2 }
  0x25   : > { %s829_s10 = sshll.u32 %s997_s9, 7 }
  0x26   : > { %s168_s11 = ssub.s32 256, %s829_s10 }
  0x27   : > { %169 = vsyncadd %s832_s20, %s168_s11  ;;  %p484_p1 = scmp.ne.s32.totalorder %s829_s10, 0  ;;  %s507_s24 = smul.u32 6, %s711_s18 }
  0x28   : > { %s176_s25 = sshll.u32 %s161_s21, 4  ;;  %s593_s21 = scalar_lea.hbm %s974_s0, 1152  ;;  %s838_s25 = int_to_ptr.vmem [resolvable:$true] %s176_s25 }
  0x29   : > { %s172_s28 = sadd.s32 %s707_s17, %s507_s24 }
  0x2a   : > { %s486_s29 = sshll.u32 %s172_s28, 7 }
  0x2b   : > { %s843_s6 = scalar_lea.hbm %s974_s0, %s486_s29 }
  0x2c   : > { %s589_s8 = scalar_lea.hbm %s843_s6, %s829_s10  ;;  %p594_p5 = scmp.lt.u32.totalorder %s843_s6, %s974_s0 }
  0x2d   : > { %p590_p2 = scmp.ne.s32.totalorder %s843_s6, %s589_s8  ;;  %p595_p6 = scmp.lt.u32.totalorder %s593_s21, %s589_s8 }
  0x2e   : > { %p597_p10 = scmp.lt.u32.totalorder %s589_s8, %s843_s6 }
  0x2f   : > { %p591_p3 = pnand %p590_p2, %p484_p1  ;;  %p596_p7 = por %p595_p6, %p594_p5 }
  0x31   : > { %p592_p4 = pneg %p591_p3  ;;  %p598_p11 = por %p597_p10, %p596_p7 }
  0x33   : > { %p599_p13 = pnand %p598_p11, %p592_p4 }
  0x35   : > { %602 = shalt.err (!%p599_p13)
}
  0x36   : > { %s603_s29 = scalar_lea.vmem %s838_s25, %s829_s10  ;;  %s717_s30 = smov [#allocation2]  }
  0x37   : > { %p604_p0 = scmp.ne.s32.totalorder %s838_s25, %s603_s29  ;;  %s607_s7 = sshll.u32 %s717_s30, 4  ;;  %s608_s7 = int_to_ptr.vmem [resolvable:$false] %s607_s7 }
  0x38   : > { %s609_s9 = scalar_lea.vmem %s608_s7, 512  ;;  %p610_p12 = scmp.lt.s32.totalorder %s838_s25, %s608_s7 }
  0x39   : > { %p605_p2 = pnand %p604_p0, %p484_p1  ;;  %p611_p5 = scmp.lt.s32.totalorder %s609_s9, %s603_s29 }
  0x3b   : > { %p606_p3 = pneg %p605_p2  ;;  %p612_p6 = por %p611_p5, %p610_p12 }
  0x3d   : > { %p613_p7 = pnand %p612_p6, %p606_p3 }
  0x3f   : > { %616 = shalt.err (!%p613_p7)
}
  0x40   : > { %s718_s8 = smov 384   ;;  %s719_s11 = smov 128  }
  0x41   : > { %s720_s21 = smov 8  }
  0x42   : > { %182 = dma.hbm_to_vmem [thread:$0]  (%p484_p1), %s843_s6, %s829_s10, %s838_s25, %s832_s20, %s718_s8, %s719_s11, %s720_s21  }
  0x43 PF: > { %p489_p4 = scmp.ge.s32.totalorder %s715_s19, 1  ;;  %p218_p10 = scmp.lt.s32.totalorder %s715_s19, 7 }
  0x45   : > { %p219_p11 = pnand %p489_p4, %p218_p10 }
  0x46   : > { %s873_s24 = sand.u32 (!%p219_p11), 1, %s691_s13  }
  0x47   : > { %222 = sbr.rel (%p219_p11) target bundleno = 257 (0x101), region = 32  ;;  %s490_s28 = sshll.u32 (!%p219_p11), %s873_s24, 4 }
  0x48   : > { %s225_s29 = scalar_lea.sflag (!%p219_p11), [#allocation3], %s873_s24  ;;  %s879_s30 = scalar_lea.vmem (!%p219_p11), [#allocation2], %s490_s28 }
  0x4e   : > { %678 = dma.done.wait (%p806_p8), %s225_s29, 256  }
  0x4f   : > { %680 = vsyncadd (%p806_p8), %s225_s29, 4294967040  ;;  %s886_s10 = sshll.u32 %s703_s16, 1  ;;  %v721_v0 = vmov 0   ;;  %s496_s20 = sshll.u32 %s699_s15, 7  ;;  %v313_v8 = vlaneseq  ;;  %v325_v11 = vld [vmem:[%s879_s30] sm:$0xff]  ;;  %v326_v15 = vld [vmem:[%s879_s30 + $0x8] sm:$0xff] }
  0x50   : > { %588 = vset.pattern.permute.xlu1 %v721_v0  ;;  %p279_p12 = scmp.lt.s32.totalorder %s886_s10, 2  ;;  %587 = vset.pattern.permute.xlu0 %v721_v0  ;;  %v310_v1 = vstv %s496_s20  ;;  %s268_s29 = scalar_lea.vmem [#allocation5], %s490_s28 }
  0x51   : > { %v314_v9 = vand.u32 127, %v313_v8  ;;  %s344_s20 = scalar_lea.sflag [#allocation4], %s873_s24 }
  0x52   : > { %s280_s25 = scalar_select %p279_p12, %s886_s10, 2 }
  0x54   : > { %s493_s6 = sshll.u32 %s280_s25, 3  ;;  %s352_s25 = ssub.s32 (%p810_p9), 3, %s886_s10 }
  0x55   : > { %s296_s26 = scalar_lea.vmem %s976_s2, %s493_s6  ;;  %s282_s21 = scalar_lea.vmem %s975_s1, %s493_s6 }
  0x56   : > { %v323_v2 = vld [vmem:[%s296_s26] sm:$0xff]  ;;  %v308_v4 = vld [vmem:[%s282_s21 + $0x8] sm:$0xff]  ;;  %p353_p8 = scmp.lt.s32.totalorder (%p810_p9), %s352_s25, 2 }
  0x57   : > { %v307_v3 = vld [vmem:[%s282_s21] sm:$0xff]  ;;  %329 = vperm.xlu1 %588, %v323_v2   ;;  %v324_v6 = vld [vmem:[%s296_s26 + $0x8] sm:$0xff]  ;;  %v312_v7 = vsub.s32 %v308_v4, %v310_v1 }
  0x58   : > { %v311_v5 = vsub.s32 %v307_v3, %v310_v1 }
  0x5a   : > { %316 = vperm.xlu0 %587, %v311_v5  }
  0x5b   : > { %334 = vperm.xlu1 %588, %v324_v6  }
  0x5e   : > { %319 = vperm.xlu0 %587, %v312_v7  }
  0xd6   : > { %v330_v10 = vpop.permute.xlu1 %329 }
  0xd9   : > { %v317_v12 = vpop.permute.xlu0 %316 }
  0xda   : > { %vm321_vm0 = vcmp.eq.s32.totalorder %v314_v9, %v317_v12  ;;  %v335_v17 = vpop.permute.xlu1 %334 }
  0xdb   : > { %v337_v13 = vsel %vm321_vm0, %v330_v10, %v325_v11 }
  0xdc   : > { %v339_v14 = vmul.f32 64.0, %v337_v13  ;;  %350 = sbr.rel (!%p810_p9) target bundleno = 257 (0x101), region = 40 }
  0xdd   : > { %v320_v16 = vpop.permute.xlu0 %319 }
  0xde   : > { %341 = vst [vmem:[%s268_s29] sm:$0xff] %v339_v14  ;;  %vm322_vm1 = vcmp.eq.s32.totalorder %v314_v9, %v320_v16 }
  0xdf   : > { %v338_v18 = vsel %vm322_vm1, %v335_v17, %v326_v15 }
  0xe0   : > { %v340_v19 = vmul.f32 64.0, %v338_v18 }
  0xe2   : > { %342 = vst [vmem:[%s268_s29 + $0x8] sm:$0xff] %v340_v19 }
  0xe3   : > { %s999_s25 = smov (!%p353_p8, %s352_s25), 2 }
  0xe4   : > { %s905_s6 = sshll.u32 %s999_s25, 7 }
  0xe5   : > { %s357_s30 = ssub.s32 256, %s905_s6 }
  0xe6   : > { %358 = vsyncadd %s344_s20, %s357_s30  ;;  %p500_p1 = scmp.ne.s32.totalorder %s905_s6, 0  ;;  %s508_s28 = smul.u32 6, %s703_s16 }
  0xe7   : > { %s365_s27 = sshll.u32 %s268_s29, 4  ;;  %s722_s21 = smov [#allocation5]   ;;  %s913_s27 = int_to_ptr.vmem [resolvable:$true] %s365_s27 }
  0xe8   : > { %s361_s7 = sadd.s32 %s699_s15, %s508_s28  ;;  %s617_s11 = scalar_lea.vmem %s913_s27, %s905_s6 }
  0xe9   : > { %s502_s10 = sshll.u32 %s361_s7, 7  ;;  %p618_p9 = scmp.ne.s32.totalorder %s913_s27, %s617_s11 }
  0xea   : > { %s918_s8 = scalar_lea.hbm %s977_s3, %s502_s10  ;;  %s621_s16 = sshll.u32 %s722_s21, 4  ;;  %s622_s16 = int_to_ptr.vmem [resolvable:$false] %s621_s16 }
  0xeb   : > { %p619_p13 = pnand %p618_p9, %p500_p1  ;;  %s623_s15 = scalar_lea.vmem %s622_s16, 512 }
  0xec   : > { %p624_p2 = scmp.lt.s32.totalorder %s913_s27, %s622_s16  ;;  %p625_p3 = scmp.lt.s32.totalorder %s623_s15, %s617_s11 }
  0xed   : > { %p620_p0 = pneg %p619_p13 }
  0xee   : > { %p626_p5 = por %p625_p3, %p624_p2 }
  0xf0   : > { %p627_p6 = pnand %p626_p5, %p620_p0 }
  0xf2   : > { %630 = shalt.err (!%p627_p6)
}
  0xf3   : > { %s631_s29 = scalar_lea.hbm %s918_s8, %s905_s6  ;;  %s635_s28 = scalar_lea.hbm %s977_s3, 1152 }
  0xf4   : > { %p632_p7 = scmp.ne.s32.totalorder %s918_s8, %s631_s29  ;;  %p636_p11 = scmp.lt.u32.totalorder %s918_s8, %s977_s3 }
  0xf5   : > { %p637_p12 = scmp.lt.u32.totalorder %s635_s28, %s631_s29  ;;  %p639_p9 = scmp.lt.u32.totalorder %s631_s29, %s918_s8 }
  0xf6   : > { %p633_p4 = pnand %p632_p7, %p500_p1 }
  0xf7   : > { %p638_p8 = por %p637_p12, %p636_p11 }
  0xf8   : > { %p634_p10 = pneg %p633_p4 }
  0xf9   : > { %p640_p13 = por %p639_p9, %p638_p8 }
  0xfb   : > { %p641_p0 = pnand %p640_p13, %p634_p10 }
  0xfd   : > { %644 = shalt.err (!%p641_p0)
}
  0xfe   : > { %s723_s9 = smov 128   ;;  %s724_s26 = smov 384  }
  0xff   : > { %s725_s11 = smov 8  }
 0x100   : > { %371 = dma.vmem_to_hbm [thread:$0]  (%p500_p1), %s913_s27, %s905_s6, %s918_s8, %s344_s20, %s723_s9, %s724_s26, %s725_s11  }
 0x101 PF: > { %p515_p2 = scmp.ge.s32.totalorder %s715_s19, 2  ;;  %s380_s21 = sand.u32 1, %s687_s12  }
 0x102   : > { %p982_p3 = scmp.ne.s32.totalorder %s981_s4, 0  ;;  %s381_s16 = scalar_lea.sflag [#allocation4], %s380_s21 }
 0x104   : > { %p512_p5 = pnand %p515_p2, %p982_p3 }
 0x106   : > { %682 = dma.done.wait (!%p512_p5), %s381_s16, 256  }
 0x107   : > { %684 = vsyncadd (!%p512_p5), %s381_s16, 4294967040  ;;  %s19_s19 = sadd.s32 1, %s715_s19   ;;  %s983_s12 = smov %s691_s13 }
 0x108   : > { %p16_p6 = scmp.ge.s32.totalorder %s19_s19, 8   ;;  %s984_s13 = smov %s695_s14 }
 0x109   : > { %s985_s14 = smov %s822_s5  ;;  %s986_s15 = smov %s707_s17 }
 0x10a   : > { %s987_s16 = smov %s711_s18  ;;  %s988_s17 = smov %s991_s22 }
 0x10b   : > { %s989_s18 = smov %s995_s23  ;;  %18 = sbr.rel (!%p16_p6) target bundleno = 7 (0x7), region = 83 }
 0x112   :  { %386 = vsyncpa [#allocation3], 1 }
 0x113   :  { %388 = vsyncpa [#allocation3 + $0x1], 1 }
 0x114   :  { %389 = vsyncpa [#allocation4], 1 }
 0x115   :  { %391 = vsyncpa [#allocation4 + $0x1], 1 }

</bundles_post_ra>
